<compile_context>
chip_gen: v6e
topology: v6e:2x2x1
jax: 0.10.0
libtpu: 0.0.40
codegen_flags: <defaults>
</compile_context>

<pallas_src>
import jax
import jax.numpy as jnp
from jax.experimental import pallas as pl
from jax.experimental.pallas import tpu as pltpu

VOCAB = 181     # city ids 0..180
EMB = 2         # (x, y) affine coords
V_PAD = 256     # vocab padded to a multiple of 8 sublanes
TILE_N = 1024   # lane tile: multiple of 128; (V_PAD*TILE_N*4B) ~= 1 MiB mask


def _affine_kernel(ids_ref, table_ref, ox_ref, oy_ref):
    # ids_ref:   (1, T) int32      — lane-major city ids
    # table_ref: (V_PAD, 2) f32    — vocab on sublanes, col 0 = x, col 1 = y
    # ox_ref, oy_ref: (1, T) f32   — lane-dense outputs
    ids = ids_ref[...]                                              # (1, T)
    tab = table_ref[...]                                            # (V_PAD, 2)
    tx = tab[:, 0:1]                                                # (V_PAD, 1)
    ty = tab[:, 1:2]                                                # (V_PAD, 1)
    vocab = jax.lax.broadcasted_iota(jnp.int32, (V_PAD, ids.shape[1]), 0)
    hit = vocab == ids                                              # (V_PAD, T)
    # Exactly one sublane per lane matches -> the sublane-sum is an exact gather.
    ox_ref[...] = jnp.sum(jnp.where(hit, tx, 0.0), axis=0, keepdims=True)
    oy_ref[...] = jnp.sum(jnp.where(hit, ty, 0.0), axis=0, keepdims=True)


def _round_up(x, m):
    return (x + m - 1) // m * m


def affine_forward(ids, table):
    """ids: (N,) integer city ids in [0, 180]; table: (181, 2) f32 weights.

    Returns (out_x, out_y), each (N,) f32 — same as the PyTorch forward.
    NOTE: out-of-range ids silently yield 0.0 (PyTorch nn.Embedding would
    raise). For very small N a plain jnp.take beats launching any kernel;
    the kernel pays off for large batched lookups.
    """
    n = ids.shape[0]

    # Pick a lane tile: multiple of 128, capped at TILE_N, pad N up to it.
    if n <= TILE_N:
        tile_n = max(128, _round_up(n, 128))
        n_pad = tile_n
    else:
        tile_n = TILE_N
        n_pad = _round_up(n, tile_n)

    # Lane-major ids (1, n_pad); padded tail ids are 0 (results discarded).
    ids_pad = jnp.zeros((1, n_pad), jnp.int32).at[0, :n].set(ids.astype(jnp.int32))

    # Pad vocab once in the wrapper: rows 181..255 are zero, never selected.
    table_pad = jnp.zeros((V_PAD, EMB), jnp.float32).at[:VOCAB, :].set(
        table.astype(jnp.float32))

    grid = (n_pad // tile_n,)
    out_x, out_y = pl.pallas_call(
        _affine_kernel,
        out_shape=(jax.ShapeDtypeStruct((1, n_pad), jnp.float32),
                   jax.ShapeDtypeStruct((1, n_pad), jnp.float32)),
        grid=grid,
        in_specs=[
            pl.BlockSpec((1, tile_n), lambda i: (0, i)),
            pl.BlockSpec((V_PAD, EMB), lambda i: (0, 0)),   # resident table
        ],
        out_specs=(
            pl.BlockSpec((1, tile_n), lambda i: (0, i)),
            pl.BlockSpec((1, tile_n), lambda i: (0, i)),
        ),
        compiler_params=pltpu.CompilerParams(
            dimension_semantics=("parallel",)),
    )(ids_pad, table_pad)

    return out_x[0, :n], out_y[0, :n]


if __name__ == "__main__":
    key = jax.random.PRNGKey(0)
    k_w, k_x = jax.random.split(key)

    # nn.Embedding default init: weights ~ N(0, 1), shape (181, 2).
    table = jax.random.normal(k_w, (VOCAB, EMB), dtype=jnp.float32)

    # x: city ids in [0, 180], dtype long in PyTorch -> int32 here. N = 8.
    x = jax.random.randint(k_x, (8,), 0, VOCAB, dtype=jnp.int32)

    out_x, out_y = affine_forward(x, table)
    jax.block_until_ready((out_x, out_y))

    # Reference check against a plain-JAX gather.
    ref = jnp.take(table, x, axis=0)
    assert out_x.shape == (8,) and out_y.shape == (8,)
    assert jnp.allclose(out_x, ref[:, 0]) and jnp.allclose(out_y, ref[:, 1])

    print("KERNEL_OK")
</pallas_src>

<mosaic_0001>
module attributes {stable_mosaic.version = 11 : i64} {
  func.func @_affine_kernel(%arg0: i32, %arg1: memref<1x128xi32, #tpu.memory_space<vmem>>, %arg2: memref<256x2xf32, #tpu.memory_space<vmem>>, %arg3: memref<1x128xf32, #tpu.memory_space<vmem>>, %arg4: memref<1x128xf32, #tpu.memory_space<vmem>>) attributes {dimension_semantics = [#tpu.dimension_semantics<parallel>], iteration_bounds = array<i64: 1>, scalar_prefetch = 0 : i64, scratch_operands = 0 : i64, tpu.core_type = #tpu.core_type<tc>, window_params = [{transform_indices = @transform_0, window_bounds = array<i64: 1, 128>}, {pipeline_mode = #tpu.pipeline_mode<synchronous>, transform_indices = @transform_1, window_bounds = array<i64: 256, 2>}, {transform_indices = @transform_2, window_bounds = array<i64: 1, 128>}, {transform_indices = @transform_3, window_bounds = array<i64: 1, 128>}]} {
    %c0 = arith.constant 0 : index
    %c0_0 = arith.constant 0 : index
    %0 = vector.load %arg1[%c0, %c0_0] : memref<1x128xi32, #tpu.memory_space<vmem>>, vector<1x128xi32>
    %c0_1 = arith.constant 0 : index
    %c0_2 = arith.constant 0 : index
    %1 = vector.load %arg2[%c0_1, %c0_2] : memref<256x2xf32, #tpu.memory_space<vmem>>, vector<256x2xf32>
    %2 = vector.extract_strided_slice %1 {offsets = [0, 0], sizes = [256, 1], strides = [1, 1]} : vector<256x2xf32> to vector<256x1xf32>
    %3 = vector.extract_strided_slice %1 {offsets = [0, 1], sizes = [256, 1], strides = [1, 1]} : vector<256x2xf32> to vector<256x1xf32>
    %4 = tpu.iota {dimensions = array<i32: 0>} : vector<256x128xi32>
    %5 = vector.broadcast %0 : vector<1x128xi32> to vector<256x128xi32>
    %6 = arith.cmpi eq, %4, %5 : vector<256x128xi32>
    %cst = arith.constant 0.000000e+00 : f32
    %7 = vector.shape_cast %2 : vector<256x1xf32> to vector<256x1xf32>
    %8 = vector.broadcast %7 : vector<256x1xf32> to vector<256x128xf32>
    %9 = vector.broadcast %cst : f32 to vector<256x128xf32>
    %10 = arith.select %6, %8, %9 : vector<256x128xi1>, vector<256x128xf32>
    %cst_3 = arith.constant dense<0.000000e+00> : vector<128xf32>
    %11 = vector.multi_reduction <add>, %10, %cst_3 [0] : vector<256x128xf32> to vector<128xf32>
    %12 = vector.shape_cast %11 : vector<128xf32> to vector<1x128xf32>
    %c0_4 = arith.constant 0 : index
    %c0_5 = arith.constant 0 : index
    %13 = vector.load %arg3[%c0_4, %c0_5] : memref<1x128xf32, #tpu.memory_space<vmem>>, vector<1x128xf32>
    tpu.vector_store %arg3[%c0_4, %c0_5], %12 {strides = array<i32>} : memref<1x128xf32, #tpu.memory_space<vmem>>, vector<1x128xf32>,
    %cst_6 = arith.constant 0.000000e+00 : f32
    %14 = vector.shape_cast %3 : vector<256x1xf32> to vector<256x1xf32>
    %15 = vector.broadcast %14 : vector<256x1xf32> to vector<256x128xf32>
    %16 = vector.broadcast %cst_6 : f32 to vector<256x128xf32>
    %17 = arith.select %6, %15, %16 : vector<256x128xi1>, vector<256x128xf32>
    %cst_7 = arith.constant dense<0.000000e+00> : vector<128xf32>
    %18 = vector.multi_reduction <add>, %17, %cst_7 [0] : vector<256x128xf32> to vector<128xf32>
    %19 = vector.shape_cast %18 : vector<128xf32> to vector<1x128xf32>
    %c0_8 = arith.constant 0 : index
    %c0_9 = arith.constant 0 : index
    %20 = vector.load %arg4[%c0_8, %c0_9] : memref<1x128xf32, #tpu.memory_space<vmem>>, vector<1x128xf32>
    tpu.vector_store %arg4[%c0_8, %c0_9], %19 {strides = array<i32>} : memref<1x128xf32, #tpu.memory_space<vmem>>, vector<1x128xf32>,
    return
  }
  func.func @transform_0(%arg0: i32) -> (i32, i32) {
    %c0_i32 = arith.constant 0 : i32
    %c0_i32_0 = arith.constant 0 : i32
    return %c0_i32, %arg0 : i32, i32
  }
  func.func @transform_1(%arg0: i32) -> (i32, i32) {
    %c0_i32 = arith.constant 0 : i32
    %c0_i32_0 = arith.constant 0 : i32
    %c0_i32_1 = arith.constant 0 : i32
    return %c0_i32, %c0_i32_0 : i32, i32
  }
  func.func @transform_2(%arg0: i32) -> (i32, i32) {
    %c0_i32 = arith.constant 0 : i32
    %c0_i32_0 = arith.constant 0 : i32
    return %c0_i32, %arg0 : i32, i32
  }
  func.func @transform_3(%arg0: i32) -> (i32, i32) {
    %c0_i32 = arith.constant 0 : i32
    %c0_i32_0 = arith.constant 0 : i32
    return %c0_i32, %arg0 : i32, i32
  }
}

</mosaic_0001>

<bundles_post_ra>
// kernel: tpu_custom_call.1
= control target key start
LH: loop header
LB: loop body
LE: loop exit
PB: predicated region body
PF: predicated region fallthrough
CT: control target
= control target key end

     0   :  { %9 = vsyncpa [#allocation3], 0  ;;  %v627_v2 = vmov 0   ;;  %s1105_s0 = inlined_call_operand.vmem [shape: s32[1,128], index: 0, kind: input, shape index: {}]   ;;  %s1106_s1 = inlined_call_operand.vmem [shape: f32[256,2], index: 1, kind: input, shape index: {}]   ;;  %s1107_s2 = inlined_call_operand.hbm [shape: f32[1,128], index: 2, kind: output, shape index: {0}]   ;;  %s1108_s3 = inlined_call_operand.hbm [shape: f32[1,128], index: 3, kind: output, shape index: {1}]  }
   0x1   :  { %v654_v0 = vld [vmem:[%s1106_s1 + $0x10] sm:$0xff]  ;;  %v659_v1 = vld [vmem:[%s1106_s1] sm:$0xff]  ;;  %579 = vset.pattern.permute.xlu1 %v627_v2  ;;  %578 = vset.pattern.permute.xlu0 %v627_v2  ;;  %v19_v3 = vld [vmem:[%s1106_s1 + $0x18] sm:$0xff] }
   0x2   :  { %129 = vperm.xlu1 %579, %v654_v0   ;;  %119 = vperm.xlu0 %578, %v659_v1   ;;  %v17_v4 = vld [vmem:[%s1106_s1 + $0x8] sm:$0xff]  ;;  %v20_v6 = vld [vmem:[%s1106_s1 + $0x20] sm:$0xff]  ;;  %v23_v7 = vld [vmem:[%s1106_s1 + $0x38] sm:$0xff] }
   0x3   :  { %v21_v5 = vld [vmem:[%s1106_s1 + $0x28] sm:$0xff]  ;;  %v22_v8 = vld [vmem:[%s1106_s1 + $0x30] sm:$0xff] }
   0x6   :  { %134 = vperm.xlu1 %579, %v19_v3   ;;  %124 = vperm.xlu0 %578, %v17_v4  }
   0xa   :  { %144 = vperm.xlu1 %579, %v21_v5   ;;  %139 = vperm.xlu0 %578, %v20_v6  }
   0xb   :  { %10 = vsyncpa [#allocation5], 0  ;;  %v25_v9 = vld [vmem:[%s1106_s1 + $0x48] sm:$0xff]  ;;  %v24_v10 = vld [vmem:[%s1106_s1 + $0x40] sm:$0xff]  ;;  %v628_v31 = vmov 1   ;;  %v48_v32 = vlaneseq  ;;  %s630_s24 = smov [#allocation2]  }
   0xc   :  { %v27_v11 = vld [vmem:[%s1106_s1 + $0x58] sm:$0xff]  ;;  %v26_v12 = vld [vmem:[%s1106_s1 + $0x50] sm:$0xff]  ;;  %v29_v13 = vld [vmem:[%s1106_s1 + $0x68] sm:$0xff]  ;;  %s551_s25 = sshll.u32 %s630_s24, 4  ;;  %s552_s25 = int_to_ptr.vmem [resolvable:$true] %s551_s25 }
   0xd   :  { %v28_v14 = vld [vmem:[%s1106_s1 + $0x60] sm:$0xff]  ;;  %v31_v15 = vld [vmem:[%s1106_s1 + $0x78] sm:$0xff]  ;;  %v30_v16 = vld [vmem:[%s1106_s1 + $0x70] sm:$0xff]  ;;  %v754_v34 = vshrl.u32 %v48_v32, 7 }
   0xe   :  { %154 = vperm.xlu1 %579, %v23_v7   ;;  %149 = vperm.xlu0 %578, %v22_v8   ;;  %v33_v17 = vld [vmem:[%s1106_s1 + $0x88] sm:$0xff]  ;;  %v32_v18 = vld [vmem:[%s1106_s1 + $0x80] sm:$0xff]  ;;  %v35_v19 = vld [vmem:[%s1106_s1 + $0x98] sm:$0xff] }
   0xf   :  { %v34_v20 = vld [vmem:[%s1106_s1 + $0x90] sm:$0xff]  ;;  %v37_v21 = vld [vmem:[%s1106_s1 + $0xa8] sm:$0xff]  ;;  %v36_v22 = vld [vmem:[%s1106_s1 + $0xa0] sm:$0xff]  ;;  %v758_v35 = vadd.s32 8, %v754_v34  ;;  %v769_v38 = vadd.s32 16, %v754_v34  ;;  %v774_v41 = vadd.s32 24, %v754_v34 }
  0x10   :  { %v39_v23 = vld [vmem:[%s1106_s1 + $0xb8] sm:$0xff]  ;;  %v38_v24 = vld [vmem:[%s1106_s1 + $0xb0] sm:$0xff]  ;;  %v41_v25 = vld [vmem:[%s1106_s1 + $0xc8] sm:$0xff]  ;;  %v781_v44 = vadd.s32 32, %v754_v34  ;;  %v792_v48 = vadd.s32 40, %v754_v34  ;;  %v800_v53 = vadd.s32 48, %v754_v34 }
  0x11   :  { %v40_v26 = vld [vmem:[%s1106_s1 + $0xc0] sm:$0xff]  ;;  %v43_v27 = vld [vmem:[%s1106_s1 + $0xd8] sm:$0xff]  ;;  %v42_v28 = vld [vmem:[%s1106_s1 + $0xd0] sm:$0xff]  ;;  %v808_v56 = vadd.s32 56, %v754_v34  ;;  %v816_v61 = vadd.s32 64, %v754_v34  ;;  %v888_v32 = vadd.s32 136, %v754_v34 }
  0x12   :  { %164 = vperm.xlu1 %579, %v25_v9   ;;  %159 = vperm.xlu0 %578, %v24_v10   ;;  %v45_v29 = vld [vmem:[%s1106_s1 + $0xe8] sm:$0xff]  ;;  %v44_v30 = vld [vmem:[%s1106_s1 + $0xe0] sm:$0xff]  ;;  %v46_v33 = vld [vmem:[%s1106_s1 + $0xf0] sm:$0xff] }
  0x13   :  { %v763_v36 = vld [vmem:[%s1105_s0] ss:$0 sm:$0xff]  ;;  %v47_v37 = vld [vmem:[%s1106_s1 + $0xf8] sm:$0xff]  ;;  %s629_s0 = smov [#allocation4]  }
  0x14   :  { %vm85_vm0 = vcmp.eq.s32.totalorder %v754_v34, %v763_v36  ;;  %vm86_vm1 = vcmp.eq.s32.totalorder %v758_v35, %v763_v36  ;;  %vm87_vm2 = vcmp.eq.s32.totalorder %v769_v38, %v763_v36  ;;  %vm88_vm3 = vcmp.eq.s32.totalorder %v774_v41, %v763_v36  ;;  %s561_s1 = sshll.u32 %s629_s0, 4  ;;  %s562_s1 = int_to_ptr.vmem [resolvable:$true] %s561_s1 }
  0x15   :  { %vm89_vm4 = vcmp.eq.s32.totalorder %v781_v44, %v763_v36  ;;  %vm90_vm5 = vcmp.eq.s32.totalorder %v792_v48, %v763_v36  ;;  %vm91_vm6 = vcmp.eq.s32.totalorder %v800_v53, %v763_v36  ;;  %vm92_vm7 = vcmp.eq.s32.totalorder %v808_v56, %v763_v36  ;;  %s583_s26 = scalar_lea.vmem %s562_s1, 16  ;;  %s587_s27 = scalar_lea.vmem %s562_s1, 32 }
  0x16   :  { %174 = vperm.xlu1 %579, %v27_v11   ;;  %169 = vperm.xlu0 %578, %v26_v12   ;;  %vm93_vm8 = vcmp.eq.s32.totalorder %v816_v61, %v763_v36  ;;  %p584_p0 = scmp.ne.s32.totalorder %s562_s1, %s583_s26  ;;  %p588_p1 = scmp.lt.s32.totalorder %s562_s1, %s562_s1 }
  0x17   :  { %p589_p2 = scmp.lt.s32.totalorder %s587_s27, %s583_s26 }
  0x19   :  { %p590_p3 = por %p589_p2, %p588_p1 }
  0x1a   :  { %184 = vperm.xlu1 %579, %v29_v13   ;;  %179 = vperm.xlu0 %578, %v28_v14  }
  0x1b   :  { %p591_p4 = pnand %p590_p3, %p584_p0 }
  0x1e   :  { %194 = vperm.xlu1 %579, %v31_v15   ;;  %189 = vperm.xlu0 %578, %v30_v16  }
  0x22   :  { %204 = vperm.xlu1 %579, %v33_v17   ;;  %199 = vperm.xlu0 %578, %v32_v18  }
  0x26   :  { %214 = vperm.xlu1 %579, %v35_v19   ;;  %209 = vperm.xlu0 %578, %v34_v20  }
  0x2a   :  { %224 = vperm.xlu1 %579, %v37_v21   ;;  %219 = vperm.xlu0 %578, %v36_v22  }
  0x2e   :  { %234 = vperm.xlu1 %579, %v39_v23   ;;  %229 = vperm.xlu0 %578, %v38_v24  }
  0x32   :  { %244 = vperm.xlu1 %579, %v41_v25   ;;  %239 = vperm.xlu0 %578, %v40_v26  }
  0x36   :  { %254 = vperm.xlu1 %579, %v43_v27   ;;  %249 = vperm.xlu0 %578, %v42_v28  }
  0x3a   :  { %264 = vperm.xlu1 %579, %v45_v29   ;;  %259 = vperm.xlu0 %578, %v44_v30  }
  0x3e   :  { %581 = vset.pattern.permute.xlu1 %v628_v31  ;;  %580 = vset.pattern.permute.xlu0 %v628_v31 }
  0x3f   :  { %352 = vperm.xlu1 %581, %v17_v4   ;;  %348 = vperm.xlu0 %580, %v659_v1  }
  0x43   :  { %356 = vperm.xlu1 %581, %v654_v0   ;;  %360 = vperm.xlu0 %580, %v19_v3   ;;  %v824_v0 = vadd.s32 72, %v754_v34 }
  0x45   :  { %vm94_vm9 = vcmp.eq.s32.totalorder %v824_v0, %v763_v36 }
  0x47   :  { %364 = vperm.xlu1 %581, %v20_v6   ;;  %368 = vperm.xlu0 %580, %v21_v5   ;;  %v832_v5 = vadd.s32 80, %v754_v34 }
  0x49   :  { %vm95_vm10 = vcmp.eq.s32.totalorder %v832_v5, %v763_v36 }
  0x4b   :  { %372 = vperm.xlu1 %581, %v22_v8   ;;  %376 = vperm.xlu0 %580, %v23_v7   ;;  %v840_v8 = vadd.s32 88, %v754_v34 }
  0x4d   :  { %vm96_vm11 = vcmp.eq.s32.totalorder %v840_v8, %v763_v36 }
  0x4f   :  { %380 = vperm.xlu1 %581, %v24_v10   ;;  %384 = vperm.xlu0 %580, %v25_v9  }
  0x53   :  { %388 = vperm.xlu1 %581, %v26_v12   ;;  %392 = vperm.xlu0 %580, %v27_v11  }
  0x57   :  { %396 = vperm.xlu1 %581, %v28_v14   ;;  %400 = vperm.xlu0 %580, %v29_v13   ;;  %v848_v13 = vadd.s32 96, %v754_v34 }
  0x59   :  { %vm1109_vm12 = vcmp.eq.s32.totalorder %v848_v13, %v763_v36 }
  0x5b   :  { %404 = vperm.xlu1 %581, %v30_v16   ;;  %408 = vperm.xlu0 %580, %v31_v15   ;;  %v856_v16 = vadd.s32 104, %v754_v34 }
  0x5d   :  { %vm1110_vm13 = vcmp.eq.s32.totalorder %v856_v16, %v763_v36 }
  0x5f   :  { %412 = vperm.xlu1 %581, %v32_v18   ;;  %416 = vperm.xlu0 %580, %v33_v17  }
  0x63   :  { %420 = vperm.xlu1 %581, %v34_v20   ;;  %424 = vperm.xlu0 %580, %v35_v19  }
  0x67   :  { %428 = vperm.xlu1 %581, %v36_v22   ;;  %432 = vperm.xlu0 %580, %v37_v21   ;;  %v864_v21 = vadd.s32 112, %v754_v34 }
  0x69   :  { %vm1111_vm14 = vcmp.eq.s32.totalorder %v864_v21, %v763_v36 }
  0x6b   :  { %436 = vperm.xlu1 %581, %v38_v24   ;;  %440 = vperm.xlu0 %580, %v39_v23   ;;  %v872_v24 = vadd.s32 120, %v754_v34 }
  0x6d   :  { %vm1112_vm15 = vcmp.eq.s32.totalorder %v872_v24, %v763_v36 }
  0x6f   :  { %444 = vperm.xlu1 %581, %v40_v26   ;;  %448 = vperm.xlu0 %580, %v41_v25  }
  0x73   :  { %452 = vperm.xlu1 %581, %v42_v28   ;;  %456 = vperm.xlu0 %580, %v43_v27  }
  0x77   :  { %460 = vperm.xlu1 %581, %v44_v30   ;;  %464 = vperm.xlu0 %580, %v45_v29   ;;  %v880_v29 = vadd.s32 128, %v754_v34 }
  0x7b   :  { %582 = vset.pattern.permute.xlu1 %v627_v2  ;;  %468 = vperm.xlu0 %580, %v46_v33  }
  0x7c   :  { %269 = vperm.xlu1 %582, %v46_v33  }
  0x7d   :  { %v130_v39 = vpop.permute.xlu1 %129  ;;  %v120_v40 = vpop.permute.xlu0 %119 }
  0x7e   :  { %v277_v45 = vsel %vm85_vm0, %v120_v40, 0.0  ;;  %v279_v49 = vsel %vm87_vm2, %v130_v39, 0.0 }
  0x7f   :  { %472 = vperm.xlu0 %580, %v47_v37  }
  0x80   :  { %274 = vperm.xlu1 %582, %v47_v37  }
  0x81   :  { %v135_v42 = vpop.permute.xlu1 %134  ;;  %v125_v43 = vpop.permute.xlu0 %124 }
  0x82   :  { %v278_v46 = vsel %vm86_vm1, %v125_v43, 0.0  ;;  %v280_v54 = vsel %vm88_vm3, %v135_v42, 0.0  ;;  %v896_v42 = vadd.s32 144, %v754_v34 }
  0x83   :  { %v309_v47 = vadd.f32 %v278_v46, %v277_v45  ;;  %v904_v46 = vadd.s32 152, %v754_v34 }
  0x85   :  { %v310_v50 = vadd.f32 %v309_v47, %v279_v49  ;;  %v145_v51 = vpop.permute.xlu1 %144  ;;  %v140_v52 = vpop.permute.xlu0 %139 }
  0x86   :  { %v281_v57 = vsel %vm89_vm4, %v140_v52, 0.0  ;;  %v282_v62 = vsel %vm90_vm5, %v145_v51, 0.0  ;;  %v912_v52 = vadd.s32 160, %v754_v34 }
  0x87   :  { %v311_v55 = vadd.f32 %v310_v50, %v280_v54 }
  0x89   :  { %v312_v58 = vadd.f32 %v311_v55, %v281_v57  ;;  %v155_v59 = vpop.permute.xlu1 %154  ;;  %v150_v60 = vpop.permute.xlu0 %149  ;;  %v920_v57 = vadd.s32 168, %v754_v34 }
  0x8a   :  { %v283_v1 = vsel %vm91_vm6, %v150_v60, 0.0  ;;  %v284_v6 = vsel %vm92_vm7, %v155_v59, 0.0 }
  0x8b   :  { %v313_v63 = vadd.f32 %v312_v58, %v282_v62 }
  0x8d   :  { %v314_v2 = vadd.f32 %v313_v63, %v283_v1  ;;  %v165_v3 = vpop.permute.xlu1 %164  ;;  %v160_v4 = vpop.permute.xlu0 %159  ;;  %v928_v63 = vadd.s32 176, %v754_v34 }
  0x8e   :  { %v285_v9 = vsel %vm93_vm8, %v160_v4, 0.0  ;;  %v286_v14 = vsel %vm94_vm9, %v165_v3, 0.0  ;;  %v936_v3 = vadd.s32 184, %v754_v34 }
  0x8f   :  { %v315_v7 = vadd.f32 %v314_v2, %v284_v6 }
  0x91   :  { %v316_v10 = vadd.f32 %v315_v7, %v285_v9  ;;  %v175_v11 = vpop.permute.xlu1 %174  ;;  %v170_v12 = vpop.permute.xlu0 %169 }
  0x92   :  { %v287_v17 = vsel %vm95_vm10, %v170_v12, 0.0  ;;  %v288_v22 = vsel %vm96_vm11, %v175_v11, 0.0 }
  0x93   :  { %v317_v15 = vadd.f32 %v316_v10, %v286_v14  ;;  %v944_v10 = vadd.s32 192, %v754_v34  ;;  %v952_v14 = vadd.s32 200, %v754_v34 }
  0x95   :  { %v318_v18 = vadd.f32 %v317_v15, %v287_v17  ;;  %v185_v19 = vpop.permute.xlu1 %184  ;;  %v180_v20 = vpop.permute.xlu0 %179 }
  0x96   :  { %v289_v25 = vsel %vm1109_vm12, %v180_v20, 0.0  ;;  %v290_v30 = vsel %vm1110_vm13, %v185_v19, 0.0  ;;  %vm1113_vm12 = vcmp.eq.s32.totalorder %v880_v29, %v763_v36  ;;  %vm1114_vm13 = vcmp.eq.s32.totalorder %v888_v32, %v763_v36 }
  0x97   :  { %v319_v23 = vadd.f32 %v318_v18, %v288_v22  ;;  %v960_v20 = vadd.s32 208, %v754_v34 }
  0x99   :  { %v320_v26 = vadd.f32 %v319_v23, %v289_v25  ;;  %v195_v27 = vpop.permute.xlu1 %194  ;;  %v190_v28 = vpop.permute.xlu0 %189  ;;  %v968_v25 = vadd.s32 216, %v754_v34 }
  0x9a   :  { %v291_v33 = vsel %vm1111_vm14, %v190_v28, 0.0  ;;  %v292_v43 = vsel %vm1112_vm15, %v195_v27, 0.0  ;;  %vm1115_vm14 = vcmp.eq.s32.totalorder %v896_v42, %v763_v36  ;;  %vm1116_vm15 = vcmp.eq.s32.totalorder %v904_v46, %v763_v36 }
  0x9b   :  { %v321_v31 = vadd.f32 %v320_v26, %v290_v30 }
  0x9d   :  { %v322_v37 = vadd.f32 %v321_v31, %v291_v33  ;;  %v205_v39 = vpop.permute.xlu1 %204  ;;  %v200_v40 = vpop.permute.xlu0 %199  ;;  %v976_v31 = vadd.s32 224, %v754_v34 }
  0x9e   :  { %v293_v47 = vsel %vm1113_vm12, %v200_v40, 0.0  ;;  %v294_v54 = vsel %vm1114_vm13, %v205_v39, 0.0  ;;  %vm1117_vm12 = vcmp.eq.s32.totalorder %v912_v52, %v763_v36  ;;  %vm1118_vm13 = vcmp.eq.s32.totalorder %v920_v57, %v763_v36 }
  0x9f   :  { %v323_v45 = vadd.f32 %v322_v37, %v292_v43  ;;  %v984_v39 = vadd.s32 232, %v754_v34 }
  0xa1   :  { %v324_v49 = vadd.f32 %v323_v45, %v293_v47  ;;  %v215_v50 = vpop.permute.xlu1 %214  ;;  %v210_v51 = vpop.permute.xlu0 %209 }
  0xa2   :  { %v295_v58 = vsel %vm1115_vm14, %v210_v51, 0.0  ;;  %v296_v1 = vsel %vm1116_vm15, %v215_v50, 0.0  ;;  %vm1119_vm14 = vcmp.eq.s32.totalorder %v928_v63, %v763_v36  ;;  %vm1120_vm15 = vcmp.eq.s32.totalorder %v936_v3, %v763_v36 }
  0xa3   :  { %v325_v55 = vadd.f32 %v324_v49, %v294_v54 }
  0xa5   :  { %v326_v59 = vadd.f32 %v325_v55, %v295_v58  ;;  %v225_v60 = vpop.permute.xlu1 %224  ;;  %v220_v62 = vpop.permute.xlu0 %219 }
  0xa6   :  { %v297_v4 = vsel %vm1117_vm12, %v220_v62, 0.0  ;;  %v298_v11 = vsel %vm1118_vm13, %v225_v60, 0.0  ;;  %vm1121_vm12 = vcmp.eq.s32.totalorder %v944_v10, %v763_v36  ;;  %vm1122_vm13 = vcmp.eq.s32.totalorder %v952_v14, %v763_v36 }
  0xa7   :  { %v327_v2 = vadd.f32 %v326_v59, %v296_v1 }
  0xa9   :  { %v328_v6 = vadd.f32 %v327_v2, %v297_v4  ;;  %v235_v7 = vpop.permute.xlu1 %234  ;;  %v230_v9 = vpop.permute.xlu0 %229 }
  0xaa   :  { %v299_v15 = vsel %vm1119_vm14, %v230_v9, 0.0  ;;  %v300_v22 = vsel %vm1120_vm15, %v235_v7, 0.0  ;;  %vm111_vm14 = vcmp.eq.s32.totalorder %v960_v20, %v763_v36  ;;  %vm112_vm15 = vcmp.eq.s32.totalorder %v968_v25, %v763_v36 }
  0xab   :  { %v329_v12 = vadd.f32 %v328_v6, %v298_v11  ;;  %v80_v20 = vadd.s32 248, %v754_v34 }
  0xad   :  { %v330_v17 = vadd.f32 %v329_v12, %v299_v15  ;;  %v245_v18 = vpop.permute.xlu1 %244  ;;  %v240_v19 = vpop.permute.xlu0 %239 }
  0xae   :  { %v301_v26 = vsel %vm1121_vm12, %v240_v19, 0.0  ;;  %v302_v33 = vsel %vm1122_vm13, %v245_v18, 0.0  ;;  %vm113_vm12 = vcmp.eq.s32.totalorder %v976_v31, %v763_v36  ;;  %vm114_vm13 = vcmp.eq.s32.totalorder %v984_v39, %v763_v36 }
  0xaf   :  { %v331_v23 = vadd.f32 %v330_v17, %v300_v22 }
  0xb1   :  { %v332_v27 = vadd.f32 %v331_v23, %v301_v26  ;;  %v255_v28 = vpop.permute.xlu1 %254  ;;  %v250_v30 = vpop.permute.xlu0 %249 }
  0xb2   :  { %v303_v40 = vsel %vm111_vm14, %v250_v30, 0.0  ;;  %v304_v49 = vsel %vm112_vm15, %v255_v28, 0.0 }
  0xb3   :  { %v333_v37 = vadd.f32 %v332_v27, %v302_v33 }
  0xb5   :  { %v334_v43 = vadd.f32 %v333_v37, %v303_v40  ;;  %v265_v45 = vpop.permute.xlu1 %264  ;;  %v260_v47 = vpop.permute.xlu0 %259 }
  0xb6   :  { %v305_v51 = vsel %vm113_vm12, %v260_v47, 0.0  ;;  %v306_v55 = vsel %vm114_vm13, %v265_v45, 0.0 }
  0xb7   :  { %v335_v50 = vadd.f32 %v334_v43, %v304_v49 }
  0xb9   :  { %v336_v54 = vadd.f32 %v335_v50, %v305_v51 }
  0xba   :  { %v353_v58 = vpop.permute.xlu1 %352  ;;  %v349_v59 = vpop.permute.xlu0 %348 }
  0xbb   :  { %v476_v60 = vsel %vm86_vm1, %v353_v58, 0.0  ;;  %v475_v62 = vsel %vm85_vm0, %v349_v59, 0.0  ;;  %v1008_v1 = vadd.f32 %v336_v54, %v306_v55  ;;  %vm1123_vm0 = vcmp.eq.s32.totalorder %v848_v13, %v763_v36 }
  0xbc   :  { %v507_v2 = vadd.f32 %v476_v60, %v475_v62  ;;  %vm1124_vm1 = vcmp.eq.s32.totalorder %v856_v16, %v763_v36 }
  0xbe   :  { %v357_v4 = vpop.permute.xlu1 %356  ;;  %v361_v6 = vpop.permute.xlu0 %360 }
  0xbf   :  { %v477_v7 = vsel %vm87_vm2, %v357_v4, 0.0  ;;  %v478_v11 = vsel %vm88_vm3, %v361_v6, 0.0  ;;  %vm1125_vm2 = vcmp.eq.s32.totalorder %v864_v21, %v763_v36  ;;  %vm1126_vm3 = vcmp.eq.s32.totalorder %v872_v24, %v763_v36 }
  0xc0   :  { %v508_v9 = vadd.f32 %v507_v2, %v477_v7 }
  0xc2   :  { %v509_v35 = vadd.f32 %v508_v9, %v478_v11  ;;  %v365_v12 = vpop.permute.xlu1 %364  ;;  %v369_v15 = vpop.permute.xlu0 %368 }
  0xc3   :  { %v479_v17 = vsel %vm89_vm4, %v365_v12, 0.0  ;;  %v480_v19 = vsel %vm90_vm5, %v369_v15, 0.0  ;;  %vm1127_vm4 = vcmp.eq.s32.totalorder %v880_v29, %v763_v36  ;;  %vm1128_vm5 = vcmp.eq.s32.totalorder %v888_v32, %v763_v36 }
  0xc4   :  { %v510_v18 = vadd.f32 %v509_v35, %v479_v17 }
  0xc6   :  { %v511_v22 = vadd.f32 %v510_v18, %v480_v19  ;;  %v373_v38 = vpop.permute.xlu1 %372  ;;  %v377_v23 = vpop.permute.xlu0 %376 }
  0xc7   :  { %v481_v41 = vsel %vm91_vm6, %v373_v38, 0.0  ;;  %v482_v27 = vsel %vm92_vm7, %v377_v23, 0.0  ;;  %vm1129_vm6 = vcmp.eq.s32.totalorder %v896_v42, %v763_v36  ;;  %vm1130_vm7 = vcmp.eq.s32.totalorder %v904_v46, %v763_v36 }
  0xc8   :  { %v512_v26 = vadd.f32 %v511_v22, %v481_v41 }
  0xca   :  { %v513_v28 = vadd.f32 %v512_v26, %v482_v27  ;;  %v381_v44 = vpop.permute.xlu1 %380  ;;  %v385_v30 = vpop.permute.xlu0 %384 }
  0xcb   :  { %v483_v48 = vsel %vm93_vm8, %v381_v44, 0.0  ;;  %v484_v37 = vsel %vm94_vm9, %v385_v30, 0.0  ;;  %vm1131_vm8 = vcmp.eq.s32.totalorder %v912_v52, %v763_v36  ;;  %vm1132_vm9 = vcmp.eq.s32.totalorder %v920_v57, %v763_v36 }
  0xcc   :  { %v514_v33 = vadd.f32 %v513_v28, %v483_v48 }
  0xce   :  { %v515_v40 = vadd.f32 %v514_v33, %v484_v37  ;;  %v389_v53 = vpop.permute.xlu1 %388  ;;  %v393_v43 = vpop.permute.xlu0 %392  ;;  %v79_v33 = vadd.s32 240, %v754_v34 }
  0xcf   :  { %v485_v56 = vsel %vm95_vm10, %v389_v53, 0.0  ;;  %v486_v47 = vsel %vm96_vm11, %v393_v43, 0.0  ;;  %vm1133_vm10 = vcmp.eq.s32.totalorder %v928_v63, %v763_v36  ;;  %vm1134_vm11 = vcmp.eq.s32.totalorder %v936_v3, %v763_v36 }
  0xd0   :  { %v516_v45 = vadd.f32 %v515_v40, %v485_v56 }
  0xd2   :  { %v517_v49 = vadd.f32 %v516_v45, %v486_v47  ;;  %v397_v61 = vpop.permute.xlu1 %396  ;;  %v401_v50 = vpop.permute.xlu0 %400 }
  0xd3   :  { %v487_v0 = vsel %vm1123_vm0, %v397_v61, 0.0  ;;  %v488_v54 = vsel %vm1124_vm1, %v401_v50, 0.0  ;;  %vm1135_vm0 = vcmp.eq.s32.totalorder %v944_v10, %v763_v36  ;;  %vm1136_vm1 = vcmp.eq.s32.totalorder %v952_v14, %v763_v36 }
  0xd4   :  { %v518_v51 = vadd.f32 %v517_v49, %v487_v0 }
  0xd6   :  { %v519_v55 = vadd.f32 %v518_v51, %v488_v54  ;;  %v405_v5 = vpop.permute.xlu1 %404  ;;  %v409_v58 = vpop.permute.xlu0 %408 }
  0xd7   :  { %v489_v8 = vsel %vm1125_vm2, %v405_v5, 0.0  ;;  %v490_v60 = vsel %vm1126_vm3, %v409_v58, 0.0  ;;  %vm115_vm2 = vcmp.eq.s32.totalorder %v79_v33, %v763_v36 }
  0xd8   :  { %v520_v59 = vadd.f32 %v519_v55, %v489_v8 }
  0xda   :  { %v521_v62 = vadd.f32 %v520_v59, %v490_v60  ;;  %v413_v13 = vpop.permute.xlu1 %412  ;;  %v417_v2 = vpop.permute.xlu0 %416 }
  0xdb   :  { %v491_v16 = vsel %vm1127_vm4, %v413_v13, 0.0  ;;  %v492_v6 = vsel %vm1128_vm5, %v417_v2, 0.0 }
  0xdc   :  { %v522_v4 = vadd.f32 %v521_v62, %v491_v16 }
  0xde   :  { %v523_v7 = vadd.f32 %v522_v4, %v492_v6  ;;  %v421_v21 = vpop.permute.xlu1 %420  ;;  %v425_v9 = vpop.permute.xlu0 %424 }
  0xdf   :  { %v493_v24 = vsel %vm1129_vm6, %v421_v21, 0.0  ;;  %v494_v35 = vsel %vm1130_vm7, %v425_v9, 0.0 }
  0xe0   :  { %v524_v11 = vadd.f32 %v523_v7, %v493_v24 }
  0xe2   :  { %v525_v12 = vadd.f32 %v524_v11, %v494_v35  ;;  %v429_v29 = vpop.permute.xlu1 %428  ;;  %v433_v15 = vpop.permute.xlu0 %432 }
  0xe3   :  { %v495_v32 = vsel %vm1131_vm8, %v429_v29, 0.0  ;;  %v496_v18 = vsel %vm1132_vm9, %v433_v15, 0.0 }
  0xe4   :  { %v526_v17 = vadd.f32 %v525_v12, %v495_v32 }
  0xe6   :  { %v527_v19 = vadd.f32 %v526_v17, %v496_v18  ;;  %v437_v42 = vpop.permute.xlu1 %436  ;;  %v441_v22 = vpop.permute.xlu0 %440 }
  0xe7   :  { %v497_v46 = vsel %vm1133_vm10, %v437_v42, 0.0  ;;  %v498_v23 = vsel %vm1134_vm11, %v441_v22, 0.0 }
  0xe8   :  { %v528_v38 = vadd.f32 %v527_v19, %v497_v46 }
  0xea   :  { %v529_v41 = vadd.f32 %v528_v38, %v498_v23  ;;  %v445_v52 = vpop.permute.xlu1 %444  ;;  %v449_v26 = vpop.permute.xlu0 %448 }
  0xeb   :  { %v499_v57 = vsel %vm1135_vm0, %v445_v52, 0.0  ;;  %v500_v28 = vsel %vm1136_vm1, %v449_v26, 0.0 }
  0xec   :  { %v530_v27 = vadd.f32 %v529_v41, %v499_v57 }
  0xee   :  { %v531_v44 = vadd.f32 %v530_v27, %v500_v28  ;;  %v453_v63 = vpop.permute.xlu1 %452  ;;  %v457_v30 = vpop.permute.xlu0 %456 }
  0xef   :  { %v501_v3 = vsel %vm111_vm14, %v453_v63, 0.0  ;;  %v502_v10 = vsel %vm112_vm15, %v457_v30, 0.0  ;;  %vm116_vm14 = vcmp.eq.s32.totalorder %v80_v20, %v763_v36 }
  0xf0   :  { %v532_v48 = vadd.f32 %v531_v44, %v501_v3 }
  0xf2   :  { %v533_v37 = vadd.f32 %v532_v48, %v502_v10  ;;  %v461_v40 = vpop.permute.xlu1 %460  ;;  %v465_v53 = vpop.permute.xlu0 %464 }
  0xf3   :  { %v503_v14 = vsel %vm113_vm12, %v461_v40, 0.0  ;;  %v504_v56 = vsel %vm114_vm13, %v465_v53, 0.0 }
  0xf4   :  { %v534_v43 = vadd.f32 %v533_v37, %v503_v14 }
  0xf6   :  { %v535_v45 = vadd.f32 %v534_v43, %v504_v56  ;;  %v469_v47 = vpop.permute.xlu0 %468 }
  0xf7   :  { %v505_v25 = vsel %vm115_vm2, %v469_v47, 0.0  ;;  %v270_v49 = vpop.permute.xlu1 %269 }
  0xf8   :  { %v307_v61 = vsel %vm115_vm2, %v270_v49, 0.0  ;;  %v536_v50 = vadd.f32 %v535_v45, %v505_v25 }
  0xf9   :  { %v338_v31 = vadd.f32 %v1008_v1, %v307_v61 }
  0xfa   :  { %v473_v0 = vpop.permute.xlu0 %472 }
  0xfb   :  { %v506_v51 = vsel %vm116_vm14, %v473_v0, 0.0  ;;  %v275_v54 = vpop.permute.xlu1 %274 }
  0xfc   :  { %v537_v55 = vadd.f32 %v536_v50, %v506_v51  ;;  %v308_v5 = vsel %vm116_vm14, %v275_v54, 0.0 }
  0xfd   :  { %v339_v34 = vadd.f32 %v338_v31, %v308_v5 }
  0xfe   :  { %v538_v58 = vrot.slane %v537_v55, 4 }
  0xff   :  { %v340_v8 = vrot.slane %v339_v34, 4 }
 0x100   :  { %v539_v39 = vadd.f32 %v538_v58, %v537_v55 }
 0x101   :  { %v341_v59 = vadd.f32 %v340_v8, %v339_v34 }
 0x102   :  { %v540_v60 = vrot.slane %v539_v39, 2 }
 0x103   :  { %v342_v62 = vrot.slane %v341_v59, 2 }
 0x104   :  { %v541_v13 = vadd.f32 %v540_v60, %v539_v39 }
 0x105   :  { %v343_v2 = vadd.f32 %v342_v62, %v341_v59 }
 0x106   :  { %v542_v36 = vrot.slane %v541_v13, 1 }
 0x107   :  { %v344_v16 = vrot.slane %v343_v2, 1 }
 0x108   :  { %v543_v1 = vadd.f32 %v542_v36, %v541_v13 }
 0x109   :  { %v345_v4 = vadd.f32 %v344_v16, %v343_v2 }
 0x10a   :  { %544 = vst [vmem:[#allocation4] sm:$0x1] %v543_v1 }
 0x10b   :  { %346 = vst [vmem:[#allocation2] sm:$0x1] %v345_v4 }
 0x10c   :  { %594 = shalt.err (!%p591_p4)
}
 0x10d   :  { %564 = dma.vmem_to_hbm [thread:$0]  %s562_s1, 16, %s1108_s3, [#allocation5]  }
 0x10e   :  { %s603_s30 = scalar_lea.vmem %s552_s25, 16  ;;  %s607_s4 = scalar_lea.vmem %s552_s25, 32 }
 0x10f   :  { %p604_p5 = scmp.ne.s32.totalorder %s552_s25, %s603_s30  ;;  %p608_p6 = scmp.lt.s32.totalorder %s552_s25, %s552_s25 }
 0x110   :  { %p609_p7 = scmp.lt.s32.totalorder %s607_s4, %s603_s30 }
 0x112   :  { %p610_p8 = por %p609_p7, %p608_p6 }
 0x114   :  { %p611_p9 = pnand %p610_p8, %p604_p5 }
 0x116   :  { %614 = shalt.err (!%p611_p9)
}
 0x117   :  { %554 = dma.vmem_to_hbm [thread:$0]  %s552_s25, 16, %s1107_s2, [#allocation3]  }
 0x118   :  { %623 = dma.done.wait [#allocation3], 16  }
 0x119   :  { %624 = vsyncadd [#allocation3], 4294967280 }
 0x11a   :  { %625 = dma.done.wait [#allocation5], 16  }
 0x11b   :  { %626 = vsyncadd [#allocation5], 4294967280 }
 0x11c   :  { %571 = vsyncpa [#allocation3], 1 }
 0x11d   :  { %572 = vsyncpa [#allocation5], 1 }

</bundles_post_ra>
